<compile_context>
chip_gen: v6e
topology: v6e:2x2x1
jax: 0.10.0
libtpu: 0.0.40
codegen_flags: <defaults>
</compile_context>

<pallas_src>
import functools
import math
from typing import NamedTuple

import jax
import jax.numpy as jnp
from jax.experimental import pallas as pl
from jax.experimental.pallas import tpu as pltpu

_SUBLANES = 8
_DEFAULT_TILE_B = 4096   # sweep 2048-8192 if profiling says overhead-bound


def _round_up(x: int, m: int) -> int:
    return ((x + m - 1) // m) * m


class QNetParams(NamedTuple):
    """Kernel-ready params: w* are [in, out], b* are [1, out] f32."""
    w1: jax.Array
    b1: jax.Array
    w2: jax.Array
    b2: jax.Array
    w3: jax.Array
    b3: jax.Array


def _qnet_kernel(x_ref, w1_ref, b1_ref, w2_ref, b2_ref, w3_ref, b3_ref, o_ref):
    """Fused 3-layer MLP on one (tb, obs) batch tile; weights are VMEM-resident."""
    cdt = w1_ref.dtype  # MXU operand dtype (bf16 by default, f32 for exact path)
    x = x_ref[...].astype(cdt)

    h1 = jnp.dot(x, w1_ref[...], preferred_element_type=jnp.float32) + b1_ref[...]
    h1 = jnp.maximum(h1, 0.0).astype(cdt)

    h2 = jnp.dot(h1, w2_ref[...], preferred_element_type=jnp.float32) + b2_ref[...]
    h2 = jnp.maximum(h2, 0.0).astype(cdt)

    out = jnp.dot(h2, w3_ref[...], preferred_element_type=jnp.float32) + b3_ref[...]
    o_ref[...] = out.astype(o_ref.dtype)


def prepare_params(params, compute_dtype=jnp.bfloat16):
    """One-time layout conversion from PyTorch-convention params.

    params: dict with w1 [128, obs], b1 [128], w2 [64, 128], b2 [64],
            w3 [n_actions, 64], b3 [n_actions]  (all float32).
    Returns (QNetParams, n_actions).  No lane padding anywhere.
    """
    n_actions = params["w3"].shape[0]
    w1 = params["w1"].T.astype(compute_dtype)                 # [obs, 128]
    w2 = params["w2"].T.astype(compute_dtype)                 # [128, 64]
    w3 = params["w3"].T.astype(compute_dtype)                 # [64, n_actions]
    b1 = params["b1"].astype(jnp.float32).reshape(1, -1)      # [1, 128]
    b2 = params["b2"].astype(jnp.float32).reshape(1, -1)      # [1, 64]
    b3 = params["b3"].astype(jnp.float32).reshape(1, -1)      # [1, n_actions]
    return QNetParams(w1, b1, w2, b2, w3, b3), n_actions


def _choose_tile(B: int, tile_cap: int):
    """Pick (tb, Bp). tb divides Bp; Bp == B in the common case (no jnp.pad).

    Goals: >= 2 grid steps when B >= 16 (v7x megacore), tile as large as the cap
    allows, and no batch padding unless unavoidable.
    """
    if B < 2 * _SUBLANES:
        # Tiny batch: one full-dim tile (legal for any B, even non-multiple-of-8).
        return B, B

    # Target: at least 2 grid steps, multiple of 8, capped by tile_cap.
    target = min(max(tile_cap, _SUBLANES),
                 max(_SUBLANES, _round_up(pl.cdiv(B, 2), _SUBLANES)))

    if B % _SUBLANES == 0:
        # Largest multiple-of-8 divisor of B in [target/4, target] -> no padding,
        # no wrapper-side row slice.
        lo = max(_SUBLANES, target // 4)
        for tb in range(target, lo - 1, -_SUBLANES):
            if B % tb == 0:
                return tb, B

    # Rare fallback: pad the batch to a multiple of the target tile
    # (costs one extra HBM pass over x; padded rows are sliced off after).
    return target, _round_up(B, target)


@functools.partial(jax.jit, static_argnames=("n_actions", "tile_b"))
def qnetwork_medium_forward(x, qp: QNetParams, *, n_actions: int,
                            tile_b: int = _DEFAULT_TILE_B):
    """x: [B, obs_size] float32 (or bfloat16) -> [B, n_actions] float32."""
    B, obs = x.shape
    assert qp.w3.shape[1] == n_actions

    tb, Bp = _choose_tile(B, tile_b)
    if Bp != B:
        x = jnp.pad(x, ((0, Bp - B), (0, 0)))   # rare path; see _choose_tile

    grid = (Bp // tb,)

    def resident(shape):
        # Same block every grid step -> weights/biases stay resident in VMEM.
        return pl.BlockSpec(shape, lambda i: (0, 0))

    out = pl.pallas_call(
        _qnet_kernel,
        out_shape=jax.ShapeDtypeStruct((Bp, n_actions), jnp.float32),
        grid_spec=pltpu.PrefetchScalarGridSpec(
            num_scalar_prefetch=0,
            grid=grid,
            in_specs=[
                pl.BlockSpec((tb, obs), lambda i: (i, 0)),   # streamed x tile
                resident(qp.w1.shape), resident(qp.b1.shape),
                resident(qp.w2.shape), resident(qp.b2.shape),
                resident(qp.w3.shape), resident(qp.b3.shape),
            ],
            # Block last dim == full array dim (n_actions) -> legal, unpadded store.
            out_specs=pl.BlockSpec((tb, n_actions), lambda i: (i, 0)),
        ),
        compiler_params=pltpu.CompilerParams(
            # v7x: shard the batch grid across both TensorCores; no-op on v5e/v6e.
            dimension_semantics=("parallel",),
            # Explicit budget, safe on all chips (usage < 1 MiB at tb=4096);
            # deliberately NOT raised toward v7x's 64 MiB physical VMEM.
            vmem_limit_bytes=32 * 1024 * 1024,
        ),
    )(x, qp.w1, qp.b1, qp.w2, qp.b2, qp.w3, qp.b3)

    return out if Bp == B else out[:B]


def init_params(key, obs_size, n_actions):
    """Deterministic init mimicking PyTorch nn.Linear defaults
    (uniform(-1/sqrt(fan_in), 1/sqrt(fan_in)) for both weight and bias)."""
    dims = [(128, obs_size), (64, 128), (n_actions, 64)]
    params = {}
    for i, (fan_out, fan_in) in enumerate(dims, start=1):
        key, kw, kb = jax.random.split(key, 3)
        bound = 1.0 / math.sqrt(fan_in)
        params[f"w{i}"] = jax.random.uniform(
            kw, (fan_out, fan_in), jnp.float32, minval=-bound, maxval=bound)
        params[f"b{i}"] = jax.random.uniform(
            kb, (fan_out,), jnp.float32, minval=-bound, maxval=bound)
    return params


def _reference_forward(x, params):
    h1 = jnp.maximum(x @ params["w1"].T + params["b1"], 0.0)
    h2 = jnp.maximum(h1 @ params["w2"].T + params["b2"], 0.0)
    return h2 @ params["w3"].T + params["b3"]


if __name__ == "__main__":
    key = jax.random.PRNGKey(0)
    k_params, k_x1, k_x2, k_x3 = jax.random.split(key, 4)

    obs_size = 16
    n_actions = 4
    params = init_params(k_params, obs_size, n_actions)

    # --- exact f32 path, tiny batch (single full-dim tile, no pad) ---
    qp_f32, n_act = prepare_params(params, compute_dtype=jnp.float32)
    x_small = jax.random.normal(k_x1, (8, obs_size), jnp.float32)
    out_f32 = qnetwork_medium_forward(x_small, qp_f32, n_actions=n_act)
    jax.block_until_ready(out_f32)
    ref_small = _reference_forward(x_small, params)
    assert out_f32.shape == (8, n_actions)
    assert jnp.allclose(out_f32, ref_small, atol=1e-4, rtol=1e-4)

    # --- f32 path, multi-step grid with NO padding (tb divides B: 64 -> 2x32) ---
    x_mid = jax.random.normal(k_x3, (64, obs_size), jnp.float32)
    out_mid = qnetwork_medium_forward(x_mid, qp_f32, n_actions=n_act)
    jax.block_until_ready(out_mid)
    ref_mid = _reference_forward(x_mid, params)
    assert out_mid.shape == (64, n_actions)
    assert jnp.allclose(out_mid, ref_mid, atol=1e-4, rtol=1e-4)

    # --- default bf16-MXU path (f32 accumulation), ragged batch (pad fallback) ---
    qp_bf16, _ = prepare_params(params)  # bf16 weights
    x_big = jax.random.normal(k_x2, (37, obs_size), jnp.float32)
    out_bf16 = qnetwork_medium_forward(x_big, qp_bf16, n_actions=n_act, tile_b=16)
    jax.block_until_ready(out_bf16)
    ref_big = _reference_forward(x_big, params)
    assert out_bf16.shape == (37, n_actions)
    assert jnp.allclose(out_bf16, ref_big, atol=5e-2, rtol=5e-2)

    print("KERNEL_OK")
</pallas_src>

<mosaic_0001>
module attributes {stable_mosaic.version = 11 : i64} {
  func.func @_qnet_kernel(%arg0: i32, %arg1: memref<8x16xf32, #tpu.memory_space<vmem>>, %arg2: memref<16x128xf32, #tpu.memory_space<vmem>>, %arg3: memref<1x128xf32, #tpu.memory_space<vmem>>, %arg4: memref<128x64xf32, #tpu.memory_space<vmem>>, %arg5: memref<1x64xf32, #tpu.memory_space<vmem>>, %arg6: memref<64x4xf32, #tpu.memory_space<vmem>>, %arg7: memref<1x4xf32, #tpu.memory_space<vmem>>, %arg8: memref<8x4xf32, #tpu.memory_space<vmem>>) attributes {dimension_semantics = [#tpu.dimension_semantics<parallel>], iteration_bounds = array<i64: 1>, scalar_prefetch = 0 : i64, scratch_operands = 0 : i64, tpu.core_type = #tpu.core_type<tc>, window_params = [{transform_indices = @transform_0, window_bounds = array<i64: 8, 16>}, {pipeline_mode = #tpu.pipeline_mode<synchronous>, transform_indices = @transform_1, window_bounds = array<i64: 16, 128>}, {pipeline_mode = #tpu.pipeline_mode<synchronous>, transform_indices = @transform_2, window_bounds = array<i64: 1, 128>}, {pipeline_mode = #tpu.pipeline_mode<synchronous>, transform_indices = @transform_3, window_bounds = array<i64: 128, 64>}, {pipeline_mode = #tpu.pipeline_mode<synchronous>, transform_indices = @transform_4, window_bounds = array<i64: 1, 64>}, {pipeline_mode = #tpu.pipeline_mode<synchronous>, transform_indices = @transform_5, window_bounds = array<i64: 64, 4>}, {pipeline_mode = #tpu.pipeline_mode<synchronous>, transform_indices = @transform_6, window_bounds = array<i64: 1, 4>}, {transform_indices = @transform_7, window_bounds = array<i64: 8, 4>}]} {
    %c0 = arith.constant 0 : index
    %c0_0 = arith.constant 0 : index
    %0 = vector.load %arg1[%c0, %c0_0] : memref<8x16xf32, #tpu.memory_space<vmem>>, vector<8x16xf32>
    %c0_1 = arith.constant 0 : index
    %c0_2 = arith.constant 0 : index
    %1 = vector.load %arg2[%c0_1, %c0_2] : memref<16x128xf32, #tpu.memory_space<vmem>>, vector<16x128xf32>
    %cst = arith.constant dense<0.000000e+00> : vector<8x128xf32>
    %2 = tpu.matmul %0, %1, %cst {dimension_numbers = #tpu.dot_dimension_numbers<[1], [0], [0], [1], [0, 0, 1, 1], [], []>} : vector<8x16xf32>, vector<16x128xf32>, vector<8x128xf32> -> vector<8x128xf32>
    %c0_3 = arith.constant 0 : index
    %c0_4 = arith.constant 0 : index
    %3 = vector.load %arg3[%c0_3, %c0_4] : memref<1x128xf32, #tpu.memory_space<vmem>>, vector<1x128xf32>
    %4 = vector.broadcast %3 : vector<1x128xf32> to vector<8x128xf32>
    %5 = arith.addf %2, %4 : vector<8x128xf32>
    %cst_5 = arith.constant 0.000000e+00 : f32
    %6 = vector.broadcast %cst_5 : f32 to vector<8x128xf32>
    %7 = arith.maximumf %5, %6 : vector<8x128xf32>
    %c0_6 = arith.constant 0 : index
    %c0_7 = arith.constant 0 : index
    %8 = vector.load %arg4[%c0_6, %c0_7] : memref<128x64xf32, #tpu.memory_space<vmem>>, vector<128x64xf32>
    %cst_8 = arith.constant dense<0.000000e+00> : vector<8x64xf32>
    %9 = tpu.matmul %7, %8, %cst_8 {dimension_numbers = #tpu.dot_dimension_numbers<[1], [0], [0], [1], [0, 0, 1, 1], [], []>} : vector<8x128xf32>, vector<128x64xf32>, vector<8x64xf32> -> vector<8x64xf32>
    %c0_9 = arith.constant 0 : index
    %c0_10 = arith.constant 0 : index
    %10 = vector.load %arg5[%c0_9, %c0_10] : memref<1x64xf32, #tpu.memory_space<vmem>>, vector<1x64xf32>
    %11 = vector.broadcast %10 : vector<1x64xf32> to vector<8x64xf32>
    %12 = arith.addf %9, %11 : vector<8x64xf32>
    %cst_11 = arith.constant 0.000000e+00 : f32
    %13 = vector.broadcast %cst_11 : f32 to vector<8x64xf32>
    %14 = arith.maximumf %12, %13 : vector<8x64xf32>
    %c0_12 = arith.constant 0 : index
    %c0_13 = arith.constant 0 : index
    %15 = vector.load %arg6[%c0_12, %c0_13] : memref<64x4xf32, #tpu.memory_space<vmem>>, vector<64x4xf32>
    %cst_14 = arith.constant dense<0.000000e+00> : vector<8x4xf32>
    %16 = tpu.matmul %14, %15, %cst_14 {dimension_numbers = #tpu.dot_dimension_numbers<[1], [0], [0], [1], [0, 0, 1, 1], [], []>} : vector<8x64xf32>, vector<64x4xf32>, vector<8x4xf32> -> vector<8x4xf32>
    %c0_15 = arith.constant 0 : index
    %c0_16 = arith.constant 0 : index
    %17 = vector.load %arg7[%c0_15, %c0_16] : memref<1x4xf32, #tpu.memory_space<vmem>>, vector<1x4xf32>
    %18 = vector.broadcast %17 : vector<1x4xf32> to vector<8x4xf32>
    %19 = arith.addf %16, %18 : vector<8x4xf32>
    %c0_17 = arith.constant 0 : index
    %c0_18 = arith.constant 0 : index
    %20 = vector.load %arg8[%c0_17, %c0_18] : memref<8x4xf32, #tpu.memory_space<vmem>>, vector<8x4xf32>
    tpu.vector_store %arg8[%c0_17, %c0_18], %19 {strides = array<i32>} : memref<8x4xf32, #tpu.memory_space<vmem>>, vector<8x4xf32>,
    return
  }
  func.func @transform_0(%arg0: i32) -> (i32, i32) {
    %c0_i32 = arith.constant 0 : i32
    %c0_i32_0 = arith.constant 0 : i32
    return %arg0, %c0_i32 : i32, i32
  }
  func.func @transform_1(%arg0: i32) -> (i32, i32) {
    %c0_i32 = arith.constant 0 : i32
    %c0_i32_0 = arith.constant 0 : i32
    %c0_i32_1 = arith.constant 0 : i32
    return %c0_i32, %c0_i32_0 : i32, i32
  }
  func.func @transform_2(%arg0: i32) -> (i32, i32) {
    %c0_i32 = arith.constant 0 : i32
    %c0_i32_0 = arith.constant 0 : i32
    %c0_i32_1 = arith.constant 0 : i32
    return %c0_i32, %c0_i32_0 : i32, i32
  }
  func.func @transform_3(%arg0: i32) -> (i32, i32) {
    %c0_i32 = arith.constant 0 : i32
    %c0_i32_0 = arith.constant 0 : i32
    %c0_i32_1 = arith.constant 0 : i32
    return %c0_i32, %c0_i32_0 : i32, i32
  }
  func.func @transform_4(%arg0: i32) -> (i32, i32) {
    %c0_i32 = arith.constant 0 : i32
    %c0_i32_0 = arith.constant 0 : i32
    %c0_i32_1 = arith.constant 0 : i32
    return %c0_i32, %c0_i32_0 : i32, i32
  }
  func.func @transform_5(%arg0: i32) -> (i32, i32) {
    %c0_i32 = arith.constant 0 : i32
    %c0_i32_0 = arith.constant 0 : i32
    %c0_i32_1 = arith.constant 0 : i32
    return %c0_i32, %c0_i32_0 : i32, i32
  }
  func.func @transform_6(%arg0: i32) -> (i32, i32) {
    %c0_i32 = arith.constant 0 : i32
    %c0_i32_0 = arith.constant 0 : i32
    %c0_i32_1 = arith.constant 0 : i32
    return %c0_i32, %c0_i32_0 : i32, i32
  }
  func.func @transform_7(%arg0: i32) -> (i32, i32) {
    %c0_i32 = arith.constant 0 : i32
    %c0_i32_0 = arith.constant 0 : i32
    return %arg0, %c0_i32 : i32, i32
  }
}

</mosaic_0001>

<bundles_post_ra>
// kernel: qnetwork_medium_forward.1
= control target key start
LH: loop header
LB: loop body
LE: loop exit
PB: predicated region body
PF: predicated region fallthrough
CT: control target
= control target key end

     0   :  { %v397_v0 = vmov 0.0   ;;  %vm398_vm0 = vmmov 0   ;;  %vm36_vm1 = vcmask 130048   ;;  %vm220_vm2 = vcmask 523264   ;;  %s564_s1 = inlined_call_operand.vmem [shape: f32[16,128], index: 1, kind: input, shape index: {}]   ;;  %s565_s0 = inlined_call_operand.vmem [shape: f32[8,16], index: 0, kind: input, shape index: {}]   ;;  %s566_s3 = inlined_call_operand.vmem [shape: f32[128,64], index: 3, kind: input, shape index: {}]   ;;  %s567_s5 = inlined_call_operand.vmem [shape: f32[64,4], index: 5, kind: input, shape index: {}]   ;;  %s568_s2 = inlined_call_operand.vmem [shape: f32[1,128], index: 2, kind: input, shape index: {}]   ;;  %s569_s4 = inlined_call_operand.vmem [shape: f32[1,64], index: 4, kind: input, shape index: {}]   ;;  %s570_s6 = inlined_call_operand.vmem [shape: f32[1,4], index: 6, kind: input, shape index: {}]   ;;  %s571_s7 = inlined_call_operand.vmem [shape: f32[8,4], index: 7, kind: output, shape index: {}]  }
   0x1   :  { %334 = vmatprep.subr.mxu0 %v397_v0  ;;  %v28_v1 = vld [vmem:[%s564_s1 + $0x8] sm:$0xff]  ;;  %v27_v2 = vld [vmem:[%s564_s1] sm:$0xff]  ;;  %338 = vmatprep.mubr.msk.f32.mxu0 %vm398_vm0, %v397_v0  ;;  %v126_v4 = vld [vmem:[%s566_s3 + $0x78] sm:$0xff]  ;;  %vm294_vm3 = vcmask 31744  }
   0x2   :  { %335 = vmatpush3.msra.mxu0 %v28_v1  ;;  %v26_v3 = vld [vmem:[%s565_s0] sm:$0xff]  ;;  %341 = vmatprep.subr.mxu1 %v397_v0  ;;  %v125_v5 = vld [vmem:[%s566_s3 + $0x70] sm:$0xff]  ;;  %v124_v6 = vld [vmem:[%s566_s3 + $0x68] sm:$0xff] }
   0x3   :  { %336 = vmatprep.subr.mxu0 %v397_v0  ;;  %342 = vmatpush3.msra.mxu1 %v126_v4  ;;  %v123_v7 = vld [vmem:[%s566_s3 + $0x60] sm:$0xff]  ;;  %v122_v8 = vld [vmem:[%s566_s3 + $0x58] sm:$0xff]  ;;  %v121_v9 = vld [vmem:[%s566_s3 + $0x50] sm:$0xff] }
   0x4   :  { %337 = vmatpush3.msra.mxu0 %v27_v2  ;;  %343 = vmatprep.subr.mxu1 %v397_v0  ;;  %v120_v10 = vld [vmem:[%s566_s3 + $0x48] sm:$0xff]  ;;  %v119_v11 = vld [vmem:[%s566_s3 + $0x40] sm:$0xff]  ;;  %v118_v12 = vld [vmem:[%s566_s3 + $0x38] sm:$0xff] }
   0x5   :  { %339 = vmatmul.mubr.msk.f32.vlgmr.msra.gmra.mxu0 %vm36_vm1, %v26_v3  ;;  %344 = vmatpush3.msra.mxu1 %v125_v5  ;;  %v117_v13 = vld [vmem:[%s566_s3 + $0x30] sm:$0xff]  ;;  %v116_v14 = vld [vmem:[%s566_s3 + $0x28] sm:$0xff]  ;;  %v115_v15 = vld [vmem:[%s566_s3 + $0x20] sm:$0xff] }
   0x6   :  { %345 = vmatprep.subr.mxu1 %v397_v0  ;;  %373 = vmatprep.mubr.msk.f32.mxu1 %vm398_vm0, %v397_v0  ;;  %v114_v16 = vld [vmem:[%s566_s3 + $0x18] sm:$0xff]  ;;  %v113_v17 = vld [vmem:[%s566_s3 + $0x10] sm:$0xff]  ;;  %v112_v18 = vld [vmem:[%s566_s3 + $0x8] sm:$0xff] }
   0x7   :  { %346 = vmatpush3.msra.mxu1 %v124_v6  ;;  %376 = vmatprep.subr.mxu0 %v397_v0  ;;  %v111_v19 = vld [vmem:[%s566_s3] sm:$0xff]  ;;  %v212_v20 = vld [vmem:[%s567_s5 + $0x38] sm:$0xff]  ;;  %v211_v21 = vld [vmem:[%s567_s5 + $0x30] sm:$0xff] }
   0x8   :  { %347 = vmatprep.subr.mxu1 %v397_v0  ;;  %392 = vmatprep.mubr.msk.f32.mxu0 %vm398_vm0, %v397_v0  ;;  %v210_v22 = vld [vmem:[%s567_s5 + $0x28] sm:$0xff]  ;;  %v209_v23 = vld [vmem:[%s567_s5 + $0x20] sm:$0xff]  ;;  %v208_v24 = vld [vmem:[%s567_s5 + $0x18] sm:$0xff] }
   0x9   :  { %348 = vmatpush3.msra.mxu1 %v123_v7  ;;  %377 = vmatpush3.msra.mxu0 %v212_v20  ;;  %v300_v25 = vld [vmem:[%s568_s2] ss:$0 sm:$0xff]  ;;  %v207_v30 = vld [vmem:[%s567_s5 + $0x10] sm:$0xff]  ;;  %v206_v31 = vld [vmem:[%s567_s5 + $0x8] sm:$0xff] }
   0xa   :  { %349 = vmatprep.subr.mxu1 %v397_v0  ;;  %378 = vmatprep.subr.mxu0 %v397_v0  ;;  %v205_v32 = vld [vmem:[%s567_s5] sm:$0xff] }
   0xb   :  { %350 = vmatpush3.msra.mxu1 %v122_v8  ;;  %379 = vmatpush3.msra.mxu0 %v211_v21  ;;  %v302_v33 = vld [vmem:[%s569_s4] ss:$0 sm:$0xff] }
   0xc   :  { %351 = vmatprep.subr.mxu1 %v397_v0  ;;  %380 = vmatprep.subr.mxu0 %v397_v0  ;;  %v303_v38 = vld [vmem:[%s570_s6] ss:$0 sm:$0xff] }
   0xd   :  { %352 = vmatpush3.msra.mxu1 %v121_v9  ;;  %381 = vmatpush3.msra.mxu0 %v210_v22 }
   0xe   :  { %353 = vmatprep.subr.mxu1 %v397_v0  ;;  %382 = vmatprep.subr.mxu0 %v397_v0 }
   0xf   :  { %354 = vmatpush3.msra.mxu1 %v120_v10  ;;  %383 = vmatpush3.msra.mxu0 %v209_v23 }
  0x10   :  { %355 = vmatprep.subr.mxu1 %v397_v0  ;;  %384 = vmatprep.subr.mxu0 %v397_v0 }
  0x11   :  { %356 = vmatpush3.msra.mxu1 %v119_v11  ;;  %385 = vmatpush3.msra.mxu0 %v208_v24 }
  0x12   :  { %357 = vmatprep.subr.mxu1 %v397_v0  ;;  %386 = vmatprep.subr.mxu0 %v397_v0 }
  0x13   :  { %358 = vmatpush3.msra.mxu1 %v118_v12  ;;  %387 = vmatpush3.msra.mxu0 %v207_v30 }
  0x14   :  { %359 = vmatprep.subr.mxu1 %v397_v0  ;;  %388 = vmatprep.subr.mxu0 %v397_v0 }
  0x15   :  { %360 = vmatpush3.msra.mxu1 %v117_v13  ;;  %389 = vmatpush3.msra.mxu0 %v206_v31 }
  0x16   :  { %361 = vmatprep.subr.mxu1 %v397_v0  ;;  %390 = vmatprep.subr.mxu0 %v397_v0 }
  0x17   :  { %362 = vmatpush3.msra.mxu1 %v116_v14  ;;  %391 = vmatpush3.msra.mxu0 %v205_v32 }
  0x18   :  { %363 = vmatprep.subr.mxu1 %v397_v0 }
  0x19   :  { %364 = vmatpush3.msra.mxu1 %v115_v15 }
  0x1a   :  { %365 = vmatprep.subr.mxu1 %v397_v0 }
  0x1b   :  { %366 = vmatpush3.msra.mxu1 %v114_v16 }
  0x1c   :  { %367 = vmatprep.subr.mxu1 %v397_v0 }
  0x1d   :  { %368 = vmatpush3.msra.mxu1 %v113_v17 }
  0x1e   :  { %369 = vmatprep.subr.mxu1 %v397_v0 }
  0x1f   :  { %370 = vmatpush3.msra.mxu1 %v112_v18 }
  0x20   :  { %371 = vmatprep.subr.mxu1 %v397_v0 }
  0x21   :  { %372 = vmatpush3.msra.mxu1 %v111_v19 }
  0xc5   :  { %v106_v26 = vpop.f32.mrf.mxu0 }
  0xc6   :  { %v107_v27 = vadd.f32 %v300_v25, %v106_v26 }
  0xc7   :  { %v340_v28 = vpop.f32.mrf.mxu0 }
  0xc8   :  { %v110_v29 = vmax.f32 %v107_v27, 0.0 }
  0xca   :  { %374 = vmatmul.mubr.f32.vlgmr.msra.gmra.mxu1 %v110_v29 }
 0x18a   :  { %v200_v34 = vpop.f32.mrf.mxu1 }
 0x18b   :  { %v201_v35 = vadd.f32 %v302_v33, %v200_v34 }
 0x18c   :  { %v375_v36 = vpop.f32.mrf.mxu1 }
 0x18d   :  { %v204_v37 = vmax.f32 %v201_v35, 0.0 }
 0x18f   :  { %393 = vmatmul.mubr.msk.f32.vlgmr.msra.gmra.mxu0 %vm220_vm2, %v204_v37 }
 0x24f   :  { %v290_v39 = vpop.f32.mrf.mxu0 }
 0x250   :  { %v291_v40 = vadd.f32 %v303_v38, %v290_v39 }
 0x251   :  { %v394_v41 = vpop.f32.mrf.mxu0 }
 0x252   :  { %295 = vst.msk [vmem:[%s571_s7] sm:$0xff] %vm294_vm3, %v291_v40 }

</bundles_post_ra>
